<compile_context>
chip_gen: v5e
topology: v5e:2x2
jax: 0.10.0
libtpu: 0.0.40
codegen_flags: <defaults>
</compile_context>

<pallas_src>
import functools

import jax
import jax.numpy as jnp
import numpy as np
from jax import lax
from jax.experimental import pallas as pl
from jax.experimental.pallas import tpu as pltpu

_MIN_REAL_F32 = float(jnp.finfo(jnp.float32).min)
_LANES = 128


def _pad_lanes(n):
    return max(_LANES, ((n + _LANES - 1) // _LANES) * _LANES)


# ---------------------------------------------------------------------------
# FUSED kernel: per-row entropy + stable top-k rank + marginal entropy
# ---------------------------------------------------------------------------
def _fused_kernel(k, logits_ref, ent_ref, rank_ref, res_ref):
    x = logits_ref[...].astype(jnp.float32)                 # [N, C]
    n = x.shape[0]
    padn = ent_ref.shape[1]

    # --- softmax pieces (computed once, reused for entropy AND marginal) ---
    x_max = jnp.max(x, axis=-1, keepdims=True)               # [N, 1]
    shifted = x - x_max
    e = jnp.exp(shifted)                                      # [N, C]
    s1 = jnp.sum(e, axis=-1, keepdims=True)                   # [N, 1]
    s2 = jnp.sum(e * shifted, axis=-1, keepdims=True)         # [N, 1]
    inv_s1 = pl.reciprocal(s1, approx=True)                   # EUP vrcp
    inv_s1 = inv_s1 * (2.0 - s1 * inv_s1)                     # one Newton step
    ent = jnp.log(s1) - s2 * inv_s1                           # [N, 1] entropy

    # --- exact column -> lane-dense padded row relayout (shared iotas) ---
    rows = lax.broadcasted_iota(jnp.int32, (n, padn), 0)
    cols = lax.broadcasted_iota(jnp.int32, (n, padn), 1)
    eye = rows == cols
    ent_row = jnp.sum(jnp.where(eye, jnp.broadcast_to(ent, (n, padn)), 0.0),
                      axis=0, keepdims=True)                  # [1, padn]
    inv_row = jnp.sum(jnp.where(eye, jnp.broadcast_to(inv_s1, (n, padn)), 0.0),
                      axis=0, keepdims=True)                  # [1, padn]
    ent_ref[...] = ent_row                                    # lane-dense store

    # --- stable ascending-entropy rank, reduced on the MXU ---
    # beats[a, b] = 1 if row a precedes row b in the stable ascending order.
    valid = cols < n
    ent_a = jnp.broadcast_to(ent, (n, padn))                  # ent_a[a,b] = ent[a]
    ent_b = jnp.broadcast_to(ent_row, (n, padn))              # ent_b[a,b] = ent[b]
    beats = valid & ((ent_a < ent_b) | ((ent_a == ent_b) & (rows < cols)))
    ones_row = jnp.ones((1, n), jnp.float32)
    rank_row = lax.dot_general(ones_row, beats.astype(jnp.float32),
                               (((1,), (0,)), ((), ())),
                               preferred_element_type=jnp.float32)   # [1, padn]
    rank_ref[...] = rank_row                                  # lane-dense store

    # --- marginal entropy of the k most-confident rows: one MXU contraction ---
    sel_row = jnp.where((cols[:1] < n) & (rank_row < float(k)), 1.0, 0.0)
    w_row = sel_row * inv_row * (1.0 / k)                     # [1, padn]
    q = lax.dot_general(w_row[:, :n], e, (((1,), (0,)), ((), ())),
                        preferred_element_type=jnp.float32)   # [1, C] mean softmax
    log_q = jnp.maximum(jnp.log(q), _MIN_REAL_F32)            # clamp BEFORE multiply
    res = -jnp.sum(log_q * q, axis=-1, keepdims=True)         # [1, 1]
    res_ref[...] = jnp.broadcast_to(res, res_ref.shape)       # (1, 128) lane-dense


def _fused_tta(logits, k):
    """Single launch: (entropy[N], rank[N], marginal entropy scalar)."""
    n, c = logits.shape
    padn = _pad_lanes(n)
    ent, rank, res = pl.pallas_call(
        functools.partial(_fused_kernel, k),
        out_shape=(
            jax.ShapeDtypeStruct((1, padn), jnp.float32),     # per-row entropies
            jax.ShapeDtypeStruct((1, padn), jnp.float32),     # stable ranks
            jax.ShapeDtypeStruct((1, _LANES), jnp.float32),   # marginal entropy
        ),
        grid=(1,),
        in_specs=[pl.BlockSpec((n, c), lambda i: (0, 0))],
        out_specs=(
            pl.BlockSpec((1, padn), lambda i: (0, 0)),
            pl.BlockSpec((1, padn), lambda i: (0, 0)),
            pl.BlockSpec((1, _LANES), lambda i: (0, 0)),
        ),
        compiler_params=pltpu.CompilerParams(dimension_semantics=("arbitrary",)),
    )(logits)
    return ent[0, :n], rank[0, :n], res[0, 0]


# ---------------------------------------------------------------------------
# Standalone kernel: average (marginal) entropy of arbitrary [M, C] logits
# ---------------------------------------------------------------------------
def _avg_entropy_kernel(out_logits_ref, res_ref):
    x = out_logits_ref[...].astype(jnp.float32)               # [M, C]
    m = x.shape[0]
    x_max = jnp.max(x, axis=-1, keepdims=True)
    e = jnp.exp(x - x_max)
    s1 = jnp.sum(e, axis=-1, keepdims=True)
    inv = pl.reciprocal(s1, approx=True)
    inv = inv * (2.0 - s1 * inv)                               # Newton step
    rows = lax.broadcasted_iota(jnp.int32, (m, m), 0)
    cols = lax.broadcasted_iota(jnp.int32, (m, m), 1)
    inv_row = jnp.sum(jnp.where(rows == cols, jnp.broadcast_to(inv, (m, m)), 0.0),
                      axis=0, keepdims=True)                   # [1, m]
    q = lax.dot_general(inv_row, e, (((1,), (0,)), ((), ())),
                        preferred_element_type=jnp.float32) * (1.0 / m)
    log_q = jnp.maximum(jnp.log(q), _MIN_REAL_F32)
    res_ref[...] = jnp.broadcast_to(-jnp.sum(log_q * q, axis=-1, keepdims=True),
                                    res_ref.shape)


def avg_entropy(outputs):
    m, c = outputs.shape
    out = pl.pallas_call(
        _avg_entropy_kernel,
        out_shape=jax.ShapeDtypeStruct((1, _LANES), jnp.float32),
        grid=(1,),
        in_specs=[pl.BlockSpec((m, c), lambda i: (0, 0))],
        out_specs=pl.BlockSpec((1, _LANES), lambda i: (0, 0)),
        compiler_params=pltpu.CompilerParams(dimension_semantics=("arbitrary",)),
    )(outputs)
    return out[0, 0]


# ---------------------------------------------------------------------------
# Module-faithful wrapper
# ---------------------------------------------------------------------------
class EasyModelPallas:
    """JAX/Pallas port of EasyModel's compute methods."""

    def select_confident_samples(self, logits, top):
        n = logits.shape[0]
        k = max(1, int(n * top))
        _, rank, _ = _fused_tta(logits, k)                     # one kernel launch
        rank_i = jnp.round(rank).astype(jnp.int32)             # exact small ints
        # inverse permutation of the stable rank == stable argsort of entropy
        order = jnp.zeros((n,), jnp.int32).at[rank_i].set(
            jnp.arange(n, dtype=jnp.int32))
        idx = order[:k]
        # TODO(synk): the data-dependent row gather stays in plain JAX; the fused
        # confident_avg_entropy path below never materializes the gathered rows.
        return logits[idx], idx

    def avg_entropy(self, outputs):
        return avg_entropy(outputs)

    def confident_avg_entropy(self, logits, top):
        """Fused single-launch hot path: selection never leaves VMEM."""
        n = logits.shape[0]
        k = max(1, int(n * top))
        ent, _, res = _fused_tta(logits, k)
        return res, ent

    def predict(self, x):
        raise NotImplementedError

    def reset(self):
        raise NotImplementedError


# ---------------------------------------------------------------------------
# Pure-JAX references
# ---------------------------------------------------------------------------
def _ref_batch_entropy(logits):
    p = jax.nn.softmax(logits, axis=1)
    lp = jax.nn.log_softmax(logits, axis=1)
    return -jnp.sum(p * lp, axis=1)


def _ref_avg_entropy(outputs):
    lg = outputs - jax.scipy.special.logsumexp(outputs, axis=-1, keepdims=True)
    avg_logits = jax.scipy.special.logsumexp(lg, axis=0) - np.log(lg.shape[0])
    avg_logits = jnp.maximum(avg_logits, jnp.finfo(avg_logits.dtype).min)
    return -jnp.sum(avg_logits * jnp.exp(avg_logits), axis=-1)


if __name__ == "__main__":
    NAUGS, NCLASSES = 8, 32
    TOP = 0.5
    key = jax.random.PRNGKey(0)
    logits = jax.random.normal(key, (NAUGS, NCLASSES), dtype=jnp.float32) * 3.0

    model = EasyModelPallas()

    # Fused single-kernel path: entropy + selection + marginal entropy.
    ae_fused, ent_ker = model.confident_avg_entropy(logits, TOP)
    ae_fused = jax.block_until_ready(ae_fused)

    # Module-faithful separate path (select then avg_entropy).
    sel_logits, idx = model.select_confident_samples(logits, TOP)
    ae_sep = jax.block_until_ready(model.avg_entropy(sel_logits))

    # References.
    ent_ref = _ref_batch_entropy(logits)
    idx_ref = jnp.argsort(ent_ref)[: int(NAUGS * TOP)]
    ae_ref = _ref_avg_entropy(logits[idx_ref])

    # Tolerance leaves headroom for MXU f32-pass rounding in the q contraction;
    # real bugs (wrong k / wrong selection / missing clamp) produce O(0.1+) errors.
    np.testing.assert_allclose(np.asarray(ent_ker), np.asarray(ent_ref),
                               rtol=2e-3, atol=5e-3)
    np.testing.assert_allclose(np.asarray(ae_fused), np.asarray(ae_ref),
                               rtol=2e-3, atol=5e-3)
    np.testing.assert_allclose(np.asarray(ae_sep), np.asarray(ae_ref),
                               rtol=2e-3, atol=5e-3)
    assert set(np.asarray(idx).tolist()) == set(np.asarray(idx_ref).tolist())

    print("KERNEL_OK")
</pallas_src>

<mosaic_0001>
module attributes {stable_mosaic.version = 11 : i64} {
  func.func @_fused_kernel(%arg0: i32, %arg1: memref<8x32xf32, #tpu.memory_space<vmem>>, %arg2: memref<1x128xf32, #tpu.memory_space<vmem>>, %arg3: memref<1x128xf32, #tpu.memory_space<vmem>>, %arg4: memref<1x128xf32, #tpu.memory_space<vmem>>) attributes {dimension_semantics = [#tpu.dimension_semantics<arbitrary>], iteration_bounds = array<i64: 1>, scalar_prefetch = 0 : i64, scratch_operands = 0 : i64, tpu.core_type = #tpu.core_type<tc>, window_params = [{pipeline_mode = #tpu.pipeline_mode<synchronous>, transform_indices = @transform_0, window_bounds = array<i64: 8, 32>}, {pipeline_mode = #tpu.pipeline_mode<synchronous>, transform_indices = @transform_1, window_bounds = array<i64: 1, 128>}, {pipeline_mode = #tpu.pipeline_mode<synchronous>, transform_indices = @transform_2, window_bounds = array<i64: 1, 128>}, {pipeline_mode = #tpu.pipeline_mode<synchronous>, transform_indices = @transform_3, window_bounds = array<i64: 1, 128>}]} {
    %c0 = arith.constant 0 : index
    %c0_0 = arith.constant 0 : index
    %0 = vector.load %arg1[%c0, %c0_0] : memref<8x32xf32, #tpu.memory_space<vmem>>, vector<8x32xf32>
    %cst = arith.constant dense<0xFF800000> : vector<8xf32>
    %1 = vector.multi_reduction <maximumf>, %0, %cst [1] : vector<8x32xf32> to vector<8xf32>
    %2 = vector.shape_cast %1 : vector<8xf32> to vector<8x1xf32>
    %3 = vector.broadcast %2 : vector<8x1xf32> to vector<8x32xf32>
    %4 = arith.subf %0, %3 : vector<8x32xf32>
    %5 = math.exp %4 : vector<8x32xf32>
    %cst_1 = arith.constant dense<0.000000e+00> : vector<8xf32>
    %6 = vector.multi_reduction <add>, %5, %cst_1 [1] : vector<8x32xf32> to vector<8xf32>
    %7 = vector.shape_cast %6 : vector<8xf32> to vector<8x1xf32>
    %8 = arith.mulf %5, %4 : vector<8x32xf32>
    %cst_2 = arith.constant dense<0.000000e+00> : vector<8xf32>
    %9 = vector.multi_reduction <add>, %8, %cst_2 [1] : vector<8x32xf32> to vector<8xf32>
    %10 = vector.shape_cast %9 : vector<8xf32> to vector<8x1xf32>
    %11 = tpu.reciprocal %7 {approx = true} : vector<8x1xf32> -> vector<8x1xf32>
    %12 = arith.mulf %7, %11 : vector<8x1xf32>
    %cst_3 = arith.constant 2.000000e+00 : f32
    %13 = vector.broadcast %cst_3 : f32 to vector<8x1xf32>
    %14 = arith.subf %13, %12 : vector<8x1xf32>
    %15 = arith.mulf %11, %14 : vector<8x1xf32>
    %16 = math.log %7 : vector<8x1xf32>
    %17 = arith.mulf %10, %15 : vector<8x1xf32>
    %18 = arith.subf %16, %17 : vector<8x1xf32>
    %19 = tpu.iota {dimensions = array<i32: 0>} : vector<8x128xi32>
    %20 = tpu.iota {dimensions = array<i32: 1>} : vector<8x128xi32>
    %21 = arith.cmpi eq, %19, %20 : vector<8x128xi32>
    %22 = vector.shape_cast %18 : vector<8x1xf32> to vector<8x1xf32>
    %23 = vector.broadcast %22 : vector<8x1xf32> to vector<8x128xf32>
    %cst_4 = arith.constant 0.000000e+00 : f32
    %24 = vector.broadcast %cst_4 : f32 to vector<8x128xf32>
    %25 = arith.select %21, %23, %24 : vector<8x128xi1>, vector<8x128xf32>
    %cst_5 = arith.constant dense<0.000000e+00> : vector<128xf32>
    %26 = vector.multi_reduction <add>, %25, %cst_5 [0] : vector<8x128xf32> to vector<128xf32>
    %27 = vector.shape_cast %26 : vector<128xf32> to vector<1x128xf32>
    %28 = vector.shape_cast %15 : vector<8x1xf32> to vector<8x1xf32>
    %29 = vector.broadcast %28 : vector<8x1xf32> to vector<8x128xf32>
    %cst_6 = arith.constant 0.000000e+00 : f32
    %30 = vector.broadcast %cst_6 : f32 to vector<8x128xf32>
    %31 = arith.select %21, %29, %30 : vector<8x128xi1>, vector<8x128xf32>
    %cst_7 = arith.constant dense<0.000000e+00> : vector<128xf32>
    %32 = vector.multi_reduction <add>, %31, %cst_7 [0] : vector<8x128xf32> to vector<128xf32>
    %33 = vector.shape_cast %32 : vector<128xf32> to vector<1x128xf32>
    %c0_8 = arith.constant 0 : index
    %c0_9 = arith.constant 0 : index
    %34 = vector.load %arg2[%c0_8, %c0_9] : memref<1x128xf32, #tpu.memory_space<vmem>>, vector<1x128xf32>
    tpu.vector_store %arg2[%c0_8, %c0_9], %27 {strides = array<i32>} : memref<1x128xf32, #tpu.memory_space<vmem>>, vector<1x128xf32>,
    %c8_i32 = arith.constant 8 : i32
    %35 = vector.broadcast %c8_i32 : i32 to vector<8x128xi32>
    %36 = arith.cmpi slt, %20, %35 : vector<8x128xi32>
    %37 = vector.shape_cast %18 : vector<8x1xf32> to vector<8x1xf32>
    %38 = vector.broadcast %37 : vector<8x1xf32> to vector<8x128xf32>
    %39 = vector.shape_cast %27 : vector<1x128xf32> to vector<1x128xf32>
    %40 = vector.broadcast %39 : vector<1x128xf32> to vector<8x128xf32>
    %41 = arith.cmpf olt, %38, %40 : vector<8x128xf32>
    %42 = arith.cmpf oeq, %38, %40 : vector<8x128xf32>
    %43 = arith.cmpi slt, %19, %20 : vector<8x128xi32>
    %44 = arith.andi %42, %43 : vector<8x128xi1>
    %45 = arith.ori %41, %44 : vector<8x128xi1>
    %46 = arith.andi %36, %45 : vector<8x128xi1>
    %cst_10 = arith.constant 1.000000e+00 : f32
    %47 = vector.broadcast %cst_10 : f32 to vector<1x8xf32>
    %48 = arith.extui %46 : vector<8x128xi1> to vector<8x128xi32>
    %49 = arith.sitofp %48 : vector<8x128xi32> to vector<8x128xf32>
    %cst_11 = arith.constant dense<0.000000e+00> : vector<1x128xf32>
    %50 = tpu.matmul %47, %49, %cst_11 {dimension_numbers = #tpu.dot_dimension_numbers<[1], [0], [0], [1], [0, 0, 1, 1], [], []>} : vector<1x8xf32>, vector<8x128xf32>, vector<1x128xf32> -> vector<1x128xf32>
    %c0_12 = arith.constant 0 : index
    %c0_13 = arith.constant 0 : index
    %51 = vector.load %arg3[%c0_12, %c0_13] : memref<1x128xf32, #tpu.memory_space<vmem>>, vector<1x128xf32>
    tpu.vector_store %arg3[%c0_12, %c0_13], %50 {strides = array<i32>} : memref<1x128xf32, #tpu.memory_space<vmem>>, vector<1x128xf32>,
    %52 = vector.extract_strided_slice %20 {offsets = [0, 0], sizes = [1, 128], strides = [1, 1]} : vector<8x128xi32> to vector<1x128xi32>
    %c8_i32_14 = arith.constant 8 : i32
    %53 = vector.broadcast %c8_i32_14 : i32 to vector<1x128xi32>
    %54 = arith.cmpi slt, %52, %53 : vector<1x128xi32>
    %cst_15 = arith.constant 4.000000e+00 : f32
    %55 = vector.broadcast %cst_15 : f32 to vector<1x128xf32>
    %56 = arith.cmpf olt, %50, %55 : vector<1x128xf32>
    %57 = arith.andi %54, %56 : vector<1x128xi1>
    %cst_16 = arith.constant 1.000000e+00 : f32
    %cst_17 = arith.constant 0.000000e+00 : f32
    %58 = vector.broadcast %cst_16 : f32 to vector<1x128xf32>
    %59 = vector.broadcast %cst_17 : f32 to vector<1x128xf32>
    %60 = arith.select %57, %58, %59 : vector<1x128xi1>, vector<1x128xf32>
    %61 = arith.mulf %60, %33 : vector<1x128xf32>
    %cst_18 = arith.constant 2.500000e-01 : f32
    %62 = vector.broadcast %cst_18 : f32 to vector<1x128xf32>
    %63 = arith.mulf %61, %62 : vector<1x128xf32>
    %64 = vector.extract_strided_slice %63 {offsets = [0, 0], sizes = [1, 8], strides = [1, 1]} : vector<1x128xf32> to vector<1x8xf32>
    %cst_19 = arith.constant dense<0.000000e+00> : vector<1x32xf32>
    %65 = tpu.matmul %64, %5, %cst_19 {dimension_numbers = #tpu.dot_dimension_numbers<[1], [0], [0], [1], [0, 0, 1, 1], [], []>} : vector<1x8xf32>, vector<8x32xf32>, vector<1x32xf32> -> vector<1x32xf32>
    %66 = math.log %65 : vector<1x32xf32>
    %cst_20 = arith.constant -3.40282347E+38 : f32
    %67 = vector.broadcast %cst_20 : f32 to vector<1x32xf32>
    %68 = arith.maximumf %66, %67 : vector<1x32xf32>
    %69 = arith.mulf %68, %65 : vector<1x32xf32>
    %cst_21 = arith.constant dense<0.000000e+00> : vector<1xf32>
    %70 = vector.multi_reduction <add>, %69, %cst_21 [1] : vector<1x32xf32> to vector<1xf32>
    %71 = vector.shape_cast %70 : vector<1xf32> to vector<1x1xf32>
    %cst_22 = arith.constant 0.000000e+00 : f32
    %72 = vector.broadcast %cst_22 : f32 to vector<1x1xf32>
    %73 = arith.subf %72, %71 : vector<1x1xf32>
    %74 = vector.shape_cast %73 : vector<1x1xf32> to vector<1x1xf32>
    %75 = vector.broadcast %74 : vector<1x1xf32> to vector<1x128xf32>
    %c0_23 = arith.constant 0 : index
    %c0_24 = arith.constant 0 : index
    %76 = vector.load %arg4[%c0_23, %c0_24] : memref<1x128xf32, #tpu.memory_space<vmem>>, vector<1x128xf32>
    tpu.vector_store %arg4[%c0_23, %c0_24], %75 {strides = array<i32>} : memref<1x128xf32, #tpu.memory_space<vmem>>, vector<1x128xf32>,
    return
  }
  func.func @transform_0(%arg0: i32) -> (i32, i32) {
    %c0_i32 = arith.constant 0 : i32
    %c0_i32_0 = arith.constant 0 : i32
    %c0_i32_1 = arith.constant 0 : i32
    return %c0_i32, %c0_i32_0 : i32, i32
  }
  func.func @transform_1(%arg0: i32) -> (i32, i32) {
    %c0_i32 = arith.constant 0 : i32
    %c0_i32_0 = arith.constant 0 : i32
    %c0_i32_1 = arith.constant 0 : i32
    return %c0_i32, %c0_i32_0 : i32, i32
  }
  func.func @transform_2(%arg0: i32) -> (i32, i32) {
    %c0_i32 = arith.constant 0 : i32
    %c0_i32_0 = arith.constant 0 : i32
    %c0_i32_1 = arith.constant 0 : i32
    return %c0_i32, %c0_i32_0 : i32, i32
  }
  func.func @transform_3(%arg0: i32) -> (i32, i32) {
    %c0_i32 = arith.constant 0 : i32
    %c0_i32_0 = arith.constant 0 : i32
    %c0_i32_1 = arith.constant 0 : i32
    return %c0_i32, %c0_i32_0 : i32, i32
  }
}

</mosaic_0001>

<bundles_post_ra>
// kernel: tpu_custom_call.1
= control target key start
LH: loop header
LB: loop body
LE: loop exit
PB: predicated region body
PF: predicated region fallthrough
CT: control target
= control target key end

     0   :  { %9 = vsyncpa [#allocation3], 0  ;;  %s352_s0 = inlined_call_operand.hbm [shape: f32[8,32], index: 0, kind: input, shape index: {}]   ;;  %s353_s1 = inlined_call_operand.hbm [shape: f32[1,128], index: 1, kind: output, shape index: {0}]   ;;  %s354_s2 = inlined_call_operand.hbm [shape: f32[1,128], index: 2, kind: output, shape index: {1}]   ;;  %s355_s3 = inlined_call_operand.hbm [shape: f32[1,128], index: 3, kind: output, shape index: {2}]  }
   0x1   :  { %10 = vsyncpa [#allocation4], 0 }
   0x2   :  { %11 = vsyncpa [#allocation7], 0  ;;  %s17_s14 = sshll.u32 %s352_s0, 4  ;;  %s310_s15 = smov [#allocation2]   ;;  %s18_s14 = int_to_ptr.hbm [resolvable:$true] %s17_s14 }
   0x3   :  { %s19_s16 = sshll.u32 %s310_s15, 4  ;;  %s20_s16 = int_to_ptr.vmem [resolvable:$true] %s19_s16 }
   0x4   :  { %22 = dma.hbm_to_vmem [thread:$0]  %s18_s14, 128, %s20_s16, [#allocation3]  }
   0x5   :  { %304 = dma.done.wait [#allocation3], 128  }
   0x6   :  { %305 = vsyncadd [#allocation3], 4294967168  ;;  %vm28_vm0 = vcmask 261120   ;;  %v27_v0 = vld [vmem:[#allocation2] sm:$0xff]  ;;  %v50_v10 = vlaneseq  ;;  %vm79_vm8 = vcmask 64512   ;;  %v311_v30 = vmov 1.0  }
   0x7   :  { %v29_v1 = vsel %vm28_vm0, %v27_v0, -inf  ;;  %v312_v38 = vmov 0.0   ;;  %s313_s0 = smov [#allocation6]   ;;  %s160_s20 = sshll.u32 %s354_s2, 4  ;;  %vm136_vm12 = vcmask 253952   ;;  %s161_s20 = int_to_ptr.hbm [resolvable:$true] %s160_s20 }
   0x8   :  { %30 = vmax.xlane.f32.xlu0 %v29_v1  ;;  %v51_v12 = vshrl.u32 %v50_v10, 7  ;;  %v53_v13 = vand.u32 127, %v50_v10  ;;  %s158_s17 = sshll.u32 %s313_s0, 4  ;;  %s149_s23 = sshll.u32 %s353_s1, 4  ;;  %s159_s17 = int_to_ptr.vmem [resolvable:$true] %s158_s17  ;;  %s150_s23 = int_to_ptr.hbm [resolvable:$true] %s149_s23 }
   0x9   :  { %s314_s24 = smov [#allocation5]   ;;  %s315_s2 = smov [#allocation8]  }
   0xa   :  { %vm54_vm1 = vcmp.eq.s32.totalorder %v51_v12, %v53_v13  ;;  %vm73_vm2 = vcmp.lt.s32.totalorder %v51_v12, %v53_v13  ;;  %vm70_vm3 = vcmp.lt.s32.totalorder %v53_v13, 8  ;;  %s147_s25 = sshll.u32 %s314_s24, 4  ;;  %s169_s26 = sshll.u32 %s315_s2, 4  ;;  %s148_s25 = int_to_ptr.vmem [resolvable:$true] %s147_s25  ;;  %s170_s26 = int_to_ptr.vmem [resolvable:$true] %s169_s26 }
   0xb   :  { %s171_s29 = sshll.u32 %s355_s3, 4  ;;  %s172_s29 = int_to_ptr.hbm [resolvable:$true] %s171_s29 }
  0x7b   :  { %v31_v2 = vpop.xlane.xlu0 %30 }
  0x7c   :  { %v32_v3 = vsub.f32 %v27_v0, %v31_v2 }
  0x7e   :  { %v33_v4 = vmul.f32 1.442695, %v32_v3 }
  0x80   :  { %200 = vpow2.f32 %v33_v4 }
  0x86   :  { %v201_v5 = vpop.eup %200 }
  0x87   :  { %127 = vmatpush.msra.mxu1 %v201_v5  ;;  %v35_v6 = vsel %vm28_vm0, %v201_v5, 0.0  ;;  %v38_v7 = vmul.f32 %v201_v5, %v32_v3 }
  0x88   :  { %36 = vadd.xlane.f32.xlu0 %v35_v6 }
  0x89   :  { %v39_v8 = vsel %vm28_vm0, %v38_v7, 0.0 }
  0x8a   :  { %40 = vadd.xlane.f32.xlu1 %v39_v8 }
  0xfb   :  { %v37_v9 = vpop.xlane.xlu0 %36 }
  0xfc   :  { %202 = vrcp.f32 %v37_v9 }
  0xfd   :  { %204 = vlog2.f32 %v37_v9  ;;  %v41_v18 = vpop.xlane.xlu1 %40 }
 0x102   :  { %v203_v11 = vpop.eup %202 }
 0x103   :  { %v43_v14 = vmul.f32 %v203_v11, %v37_v9  ;;  %v205_v16 = vpop.eup %204 }
 0x104   :  { %v47_v19 = vmul.f32 0.6931472, %v205_v16 }
 0x105   :  { %v44_v15 = vsub.f32 2.0, %v43_v14 }
 0x107   :  { %v45_v17 = vmul.f32 %v203_v11, %v44_v15 }
 0x109   :  { %v48_v20 = vmul.f32 %v45_v17, %v41_v18  ;;  %v62_v21 = vsel %vm54_vm1, %v45_v17, 0.0 }
 0x10a   :  { %v63_v31 = vrot.slane %v62_v21, 4 }
 0x10b   :  { %v49_v22 = vsub.f32 %v47_v19, %v48_v20 }
 0x10c   :  { %v64_v32 = vadd.f32 %v63_v31, %v62_v21 }
 0x10d   :  { %v55_v23 = vsel %vm54_vm1, %v49_v22, 0.0 }
 0x10e   :  { %v56_v24 = vrot.slane %v55_v23, 4  ;;  %v65_v33 = vrot.slane %v64_v32, 2 }
 0x110   :  { %v57_v25 = vadd.f32 %v56_v24, %v55_v23  ;;  %v66_v34 = vadd.f32 %v65_v33, %v64_v32 }
 0x112   :  { %v58_v26 = vrot.slane %v57_v25, 2  ;;  %v67_v35 = vrot.slane %v66_v34, 1 }
 0x114   :  { %v59_v27 = vadd.f32 %v58_v26, %v57_v25  ;;  %v68_v37 = vadd.f32 %v67_v35, %v66_v34 }
 0x116   :  { %v60_v28 = vrot.slane %v59_v27, 1 }
 0x118   :  { %v61_v29 = vadd.f32 %v60_v28, %v59_v27 }
 0x11a   :  { %vm71_vm4 = vcmp.lt.f32.partialorder %v49_v22, %v61_v29  ;;  %vm72_vm5 = vcmp.eq.f32.partialorder %v49_v22, %v61_v29  ;;  %69 = vst [vmem:[#allocation5] sm:$0x1] %v61_v29 }
 0x11b   :  { %vm74_vm6 = vmand %vm72_vm5, %vm73_vm2  ;;  %152 = dma.vmem_to_hbm [thread:$0]  %s148_s25, 16, %s150_s23, [#allocation4]  }
 0x11c   :  { %vm75_vm7 = vmor %vm71_vm4, %vm74_vm6 }
 0x11d   :  { %vm76_vm9 = vmand %vm70_vm3, %vm75_vm7 }
 0x11e   :  { %191 = vmatpush.msk.msra.mxu0 %vm76_vm9, %v311_v30 }
 0x11f   :  { %192 = vmatmul.msk.f32.vlgmr.msra.gmra.mxu0 %vm79_vm8, %v311_v30 }
 0x19c   :  { %v100_v36 = vpop.f32.mrf.mxu0 }
 0x19d   :  { %103 = vst [vmem:[#allocation6] sm:$0x1] %v100_v36  ;;  %vm104_vm10 = vcmp.lt.f32.partialorder %v100_v36, 4.0 }
 0x19e   :  { %vm105_vm11 = vmand %vm70_vm3, %vm104_vm10  ;;  %163 = dma.vmem_to_hbm [thread:$0]  %s159_s17, 16, %s161_s20, [#allocation7]  }
 0x19f   :  { %v106_v39 = vsel %vm105_vm11, 1.0, %v312_v38 }
 0x1a0   :  { %v107_v40 = vmul.f32 %v106_v39, %v68_v37 }
 0x1a2   :  { %v108_v41 = vmul.f32 0.25, %v107_v40 }
 0x1a4   :  { %193 = vmatmul.msk.f32.vlgmr.msra.gmra.mxu1 %vm79_vm8, %v108_v41 }
 0x221   :  { %v129_v42 = vpop.f32.mrf.mxu1 }
 0x222   :  { %206 = vlog2.f32 %v129_v42 }
 0x228   :  { %v207_v43 = vpop.eup %206 }
 0x229   :  { %v133_v44 = vmul.f32 0.6931472, %v207_v43 }
 0x22b   :  { %v134_v45 = vmax.f32 %v133_v44, -3.4028235e+38 }
 0x22d   :  { %v135_v46 = vmul.f32 %v134_v45, %v129_v42 }
 0x22f   :  { %v137_v47 = vsel %vm136_vm12, %v135_v46, 0.0 }
 0x230   :  { %138 = vadd.xlane.f32.xlu1 %v137_v47 }
 0x2a3   :  { %v139_v48 = vpop.xlane.xlu1 %138 }
 0x2a4   :  { %v140_v49 = vsub.f32 0.0, %v139_v48 }
 0x2a6   :  { %141 = vst [vmem:[#allocation8] sm:$0x1] %v140_v49 }
 0x2a7   :  { %174 = dma.vmem_to_hbm [thread:$0]  %s170_s26, 16, %s172_s29, [#allocation7]  }
 0x2a8   :  { %306 = dma.done.wait [#allocation4], 16  }
 0x2a9   :  { %307 = vsyncadd [#allocation4], 4294967280 }
 0x2aa   :  { %308 = dma.done.wait [#allocation7], 32  }
 0x2ab   :  { %309 = vsyncadd [#allocation7], 4294967264 }
 0x2ac   :  { %187 = vsyncpa [#allocation3], 1 }
 0x2ad   :  { %188 = vsyncpa [#allocation4], 1 }
 0x2ae   :  { %189 = vsyncpa [#allocation7], 1 }

</bundles_post_ra>
